<compile_context>
chip_gen: v7x
topology: tpu7x:2x2x1
jax: 0.10.0
libtpu: 0.0.40
codegen_flags: <defaults>
</compile_context>

<pallas_src>
import functools

import jax
import jax.numpy as jnp
from jax.experimental import pallas as pl
from jax.experimental.pallas import tpu as pltpu

LANES = 128
SUBLANES = 8
MAX_BLOCK_ROWS = 2048        # (2048, 128) f32 block = 1 MiB per pipeline buffer


def _dice_partial_kernel(x_ref, t_ref, a_ref, b_ref, c_ref, *, n_valid):
    """Accumulate A = Σ tanh(x/2)·t, B = Σ t, C = Σ tanh(x/2) into (8,128) partials."""
    i = pl.program_id(0)                     # core (parallel) axis
    j = pl.program_id(1)                     # streaming (reduction) axis

    @pl.when(j == 0)
    def _():
        a_ref[...] = jnp.zeros_like(a_ref)
        b_ref[...] = jnp.zeros_like(b_ref)
        c_ref[...] = jnp.zeros_like(c_ref)

    block_rows, lanes = x_ref.shape
    block_elems = block_rows * lanes
    blk = i * pl.num_programs(1) + j         # logical block index
    block_start = blk * block_elems

    def accumulate(h, t):
        # (block_rows, 128) -> (block_rows//8, 8, 128) keeps every native
        # (8,128) tile intact (free); the axis-0 sum is pure VPU adds into a
        # single vreg-sized partial, followed by one add into the output ref.
        hr = h.reshape(block_rows // SUBLANES, SUBLANES, lanes)
        tr = t.reshape(block_rows // SUBLANES, SUBLANES, lanes)
        a_ref[...] += jnp.sum(hr * tr, axis=0)
        b_ref[...] += jnp.sum(tr, axis=0)
        c_ref[...] += jnp.sum(hr, axis=0)

    @pl.when(block_start + block_elems <= n_valid)
    def _():                                 # fast path: fully valid block
        x = x_ref[...].astype(jnp.float32)
        t = t_ref[...].astype(jnp.float32)
        accumulate(jnp.tanh(0.5 * x), t)

    @pl.when(block_start + block_elems > n_valid)
    def _():                                 # tail: mask ragged / OOB elements
        row_i = jax.lax.broadcasted_iota(jnp.int32, (block_rows, lanes), 0)
        lane_i = jax.lax.broadcasted_iota(jnp.int32, (block_rows, lanes), 1)
        valid = (block_start + row_i * lanes + lane_i) < n_valid
        x = jnp.where(valid, x_ref[...].astype(jnp.float32), 0.0)
        t = jnp.where(valid, t_ref[...].astype(jnp.float32), 0.0)
        # Invalid elements get h = -1, t = 0 so they cancel exactly against the
        # +0.5 * N_processed correction applied in the wrapper.
        h = jnp.where(valid, jnp.tanh(0.5 * x), -1.0)
        accumulate(h, t)


def dice_loss(inputs, targets, smooth=1.0):
    """Pallas TPU implementation of DiceLoss.forward (returns a scalar f32)."""
    x = inputs.reshape(-1)                   # keep native dtype; cast on-chip
    t = targets.reshape(-1)
    n = x.shape[0]

    # Pad only so the flat length is a multiple of 128 lanes and there are at
    # least 8 rows (<= 1023 extra elements).  Padded / out-of-bounds elements
    # are masked in-kernel, so the pad value is irrelevant.
    rows = max(pl.cdiv(n, LANES), SUBLANES)
    padded = rows * LANES
    if padded != n:
        x = jnp.pad(x, (0, padded - n))
        t = jnp.pad(t, (0, padded - n))
    x2 = x.reshape(rows, LANES)
    t2 = t.reshape(rows, LANES)

    # Grid sizing: split rows across 2 cores whenever possible (v7x megacore),
    # then stream blocks of up to MAX_BLOCK_ROWS rows per core.
    nc = 2 if rows >= 2 * SUBLANES else 1
    tiles = pl.cdiv(rows, SUBLANES)                       # 8-row tiles to cover
    tiles_per_core = pl.cdiv(tiles, nc)
    block_tiles = min(MAX_BLOCK_ROWS // SUBLANES, tiles_per_core, rows // SUBLANES)
    steps = pl.cdiv(tiles_per_core, block_tiles)
    block_tiles = pl.cdiv(tiles_per_core, steps)          # rebalance across steps
    block_rows = block_tiles * SUBLANES
    last_block = pl.cdiv(rows, block_rows) - 1            # last block with valid rows

    if nc * steps - 1 > last_block:
        # Rare: a trailing, fully-masked grid step — clamp so its DMA stays in
        # range (the kernel masks it out via the logical block index anyway).
        def in_map(i, j):
            return (jnp.minimum(i * steps + j, last_block), 0)
    else:
        def in_map(i, j):
            return (i * steps + j, 0)

    kernel = functools.partial(_dice_partial_kernel, n_valid=n)
    part_shape = jax.ShapeDtypeStruct((nc, SUBLANES, LANES), jnp.float32)
    out_spec = pl.BlockSpec((None, SUBLANES, LANES), lambda i, j: (i, 0, 0))

    a_p, b_p, c_p = pl.pallas_call(
        kernel,
        out_shape=(part_shape, part_shape, part_shape),
        grid_spec=pltpu.PrefetchScalarGridSpec(
            num_scalar_prefetch=0,
            grid=(nc, steps),
            in_specs=[
                pl.BlockSpec((block_rows, LANES), in_map),
                pl.BlockSpec((block_rows, LANES), in_map),
            ],
            out_specs=[out_spec, out_spec, out_spec],
        ),
        compiler_params=pltpu.CompilerParams(
            dimension_semantics=("parallel", "arbitrary"),
            vmem_limit_bytes=32 * 1024 * 1024,
        ),
    )(x2, t2)

    # Finish the tiny reductions + dice formula in plain JAX.
    A = jnp.sum(a_p)                          # Σ tanh(x/2)·t        (valid elems)
    B = jnp.sum(b_p)                          # Σ t                  (valid elems)
    C = jnp.sum(c_p)                          # Σ tanh(x/2)          (all processed; invalid = -1)
    n_processed = nc * steps * block_rows * LANES
    intersection = 0.5 * (A + B)              # Σ sigmoid(x)·t
    inputs_sum = 0.5 * (C + n_processed)      # Σ sigmoid(x)
    dice = (2.0 * intersection + smooth) / (inputs_sum + B + smooth)
    return (1.0 - dice).astype(jnp.float32)


def dice_loss_ref(inputs, targets, smooth=1.0):
    """Pure-JAX reference matching the PyTorch semantics."""
    x = jax.nn.sigmoid(inputs.reshape(-1).astype(jnp.float32))
    t = targets.reshape(-1).astype(jnp.float32)
    inter = jnp.sum(x * t)
    dice = (2.0 * inter + smooth) / (jnp.sum(x) + jnp.sum(t) + smooth)
    return 1.0 - dice


if __name__ == "__main__":
    key = jax.random.PRNGKey(0)
    k1, k2 = jax.random.split(key)

    # Segmentation-style logits/targets pair (N, C, H, W) -> 2048 elements.
    shape = (2, 4, 16, 16)
    inputs = jax.random.normal(k1, shape, dtype=jnp.float32)
    targets = (jax.random.uniform(k2, shape) > 0.5).astype(jnp.float32)

    out = jax.block_until_ready(dice_loss(inputs, targets, smooth=1.0))
    ref = dice_loss_ref(inputs, targets, smooth=1.0)
    assert jnp.allclose(out, ref, atol=1e-5, rtol=1e-5), (out, ref)

    # Ragged size (945 elements) exercises the in-kernel masked-tail path.
    shape2 = (3, 5, 9, 7)
    inp2 = jax.random.normal(k1, shape2, dtype=jnp.float32)
    tgt2 = (jax.random.uniform(k2, shape2) > 0.5).astype(jnp.float32)
    out2 = jax.block_until_ready(dice_loss(inp2, tgt2, smooth=1.0))
    ref2 = dice_loss_ref(inp2, tgt2, smooth=1.0)
    assert jnp.allclose(out2, ref2, atol=1e-5, rtol=1e-5), (out2, ref2)

    print("KERNEL_OK")
</pallas_src>

<mosaic_0001>
module attributes {stable_mosaic.version = 11 : i64} {
  func.func @_dice_partial_kernel(%arg0: i32, %arg1: i32, %arg2: memref<8x128xf32, #tpu.memory_space<vmem>>, %arg3: memref<8x128xf32, #tpu.memory_space<vmem>>, %arg4: memref<1x8x128xf32, #tpu.memory_space<vmem>>, %arg5: memref<1x8x128xf32, #tpu.memory_space<vmem>>, %arg6: memref<1x8x128xf32, #tpu.memory_space<vmem>>) attributes {dimension_semantics = [#tpu.dimension_semantics<parallel>, #tpu.dimension_semantics<arbitrary>], iteration_bounds = array<i64: 2, 1>, scalar_prefetch = 0 : i64, scratch_operands = 0 : i64, tpu.core_type = #tpu.core_type<tc>, window_params = [{transform_indices = @transform_0, window_bounds = array<i64: 8, 128>}, {transform_indices = @transform_1, window_bounds = array<i64: 8, 128>}, {transform_indices = @transform_2, window_bounds = array<i64: 1, 8, 128>}, {transform_indices = @transform_3, window_bounds = array<i64: 1, 8, 128>}, {transform_indices = @transform_4, window_bounds = array<i64: 1, 8, 128>}]} {
    %c0_i32 = arith.constant 0 : i32
    %0 = arith.cmpi eq, %arg1, %c0_i32 : i32
    %1 = arith.extui %0 : i1 to i32
    %c0_i32_0 = arith.constant 0 : i32
    %2 = arith.cmpi ne, %1, %c0_i32_0 : i32
    scf.if %2 {
      %cst = arith.constant 0.000000e+00 : f32
      %14 = vector.broadcast %cst : f32 to vector<8x128xf32>
      %c0 = arith.constant 0 : index
      %c0_6 = arith.constant 0 : index
      %c0_7 = arith.constant 0 : index
      %15 = vector.load %arg4[%c0, %c0_6, %c0_7] : memref<1x8x128xf32, #tpu.memory_space<vmem>>, vector<1x8x128xf32>
      %16 = vector.shape_cast %15 : vector<1x8x128xf32> to vector<8x128xf32>
      %17 = vector.shape_cast %14 : vector<8x128xf32> to vector<1x8x128xf32>
      tpu.vector_store %arg4[%c0, %c0_6, %c0_7], %17 {strides = array<i32>} : memref<1x8x128xf32, #tpu.memory_space<vmem>>, vector<1x8x128xf32>,
      %cst_8 = arith.constant 0.000000e+00 : f32
      %18 = vector.broadcast %cst_8 : f32 to vector<8x128xf32>
      %c0_9 = arith.constant 0 : index
      %c0_10 = arith.constant 0 : index
      %c0_11 = arith.constant 0 : index
      %19 = vector.load %arg5[%c0_9, %c0_10, %c0_11] : memref<1x8x128xf32, #tpu.memory_space<vmem>>, vector<1x8x128xf32>
      %20 = vector.shape_cast %19 : vector<1x8x128xf32> to vector<8x128xf32>
      %21 = vector.shape_cast %18 : vector<8x128xf32> to vector<1x8x128xf32>
      tpu.vector_store %arg5[%c0_9, %c0_10, %c0_11], %21 {strides = array<i32>} : memref<1x8x128xf32, #tpu.memory_space<vmem>>, vector<1x8x128xf32>,
      %cst_12 = arith.constant 0.000000e+00 : f32
      %22 = vector.broadcast %cst_12 : f32 to vector<8x128xf32>
      %c0_13 = arith.constant 0 : index
      %c0_14 = arith.constant 0 : index
      %c0_15 = arith.constant 0 : index
      %23 = vector.load %arg6[%c0_13, %c0_14, %c0_15] : memref<1x8x128xf32, #tpu.memory_space<vmem>>, vector<1x8x128xf32>
      %24 = vector.shape_cast %23 : vector<1x8x128xf32> to vector<8x128xf32>
      %25 = vector.shape_cast %22 : vector<8x128xf32> to vector<1x8x128xf32>
      tpu.vector_store %arg6[%c0_13, %c0_14, %c0_15], %25 {strides = array<i32>} : memref<1x8x128xf32, #tpu.memory_space<vmem>>, vector<1x8x128xf32>,
    } else {
    }
    %c1_i32 = arith.constant 1 : i32
    %3 = arith.muli %arg0, %c1_i32 : i32
    %4 = arith.addi %3, %arg1 : i32
    %c1024_i32 = arith.constant 1024 : i32
    %5 = arith.muli %4, %c1024_i32 : i32
    %c1024_i32_1 = arith.constant 1024 : i32
    %6 = arith.addi %5, %c1024_i32_1 : i32
    %c2048_i32 = arith.constant 2048 : i32
    %7 = arith.cmpi sle, %6, %c2048_i32 : i32
    %8 = arith.extui %7 : i1 to i32
    %c0_i32_2 = arith.constant 0 : i32
    %9 = arith.cmpi ne, %8, %c0_i32_2 : i32
    scf.if %9 {
      %c0 = arith.constant 0 : index
      %c0_6 = arith.constant 0 : index
      %14 = vector.load %arg2[%c0, %c0_6] : memref<8x128xf32, #tpu.memory_space<vmem>>, vector<8x128xf32>
      %c0_7 = arith.constant 0 : index
      %c0_8 = arith.constant 0 : index
      %15 = vector.load %arg3[%c0_7, %c0_8] : memref<8x128xf32, #tpu.memory_space<vmem>>, vector<8x128xf32>
      %cst = arith.constant 5.000000e-01 : f32
      %16 = vector.broadcast %cst : f32 to vector<8x128xf32>
      %17 = arith.mulf %16, %14 : vector<8x128xf32>
      %18 = math.tanh %17 : vector<8x128xf32>
      %19 = vector.shape_cast %18 : vector<8x128xf32> to vector<1x8x128xf32>
      %20 = vector.shape_cast %15 : vector<8x128xf32> to vector<1x8x128xf32>
      %c0_9 = arith.constant 0 : index
      %c0_10 = arith.constant 0 : index
      %c0_11 = arith.constant 0 : index
      %21 = vector.load %arg4[%c0_9, %c0_10, %c0_11] : memref<1x8x128xf32, #tpu.memory_space<vmem>>, vector<1x8x128xf32>
      %22 = vector.shape_cast %21 : vector<1x8x128xf32> to vector<8x128xf32>
      %23 = arith.mulf %19, %20 : vector<1x8x128xf32>
      %cst_12 = arith.constant dense<0.000000e+00> : vector<8x128xf32>
      %24 = vector.multi_reduction <add>, %23, %cst_12 [0] : vector<1x8x128xf32> to vector<8x128xf32>
      %25 = arith.addf %22, %24 : vector<8x128xf32>
      %c0_13 = arith.constant 0 : index
      %c0_14 = arith.constant 0 : index
      %c0_15 = arith.constant 0 : index
      %26 = vector.load %arg4[%c0_13, %c0_14, %c0_15] : memref<1x8x128xf32, #tpu.memory_space<vmem>>, vector<1x8x128xf32>
      %27 = vector.shape_cast %26 : vector<1x8x128xf32> to vector<8x128xf32>
      %28 = vector.shape_cast %25 : vector<8x128xf32> to vector<1x8x128xf32>
      tpu.vector_store %arg4[%c0_13, %c0_14, %c0_15], %28 {strides = array<i32>} : memref<1x8x128xf32, #tpu.memory_space<vmem>>, vector<1x8x128xf32>,
      %c0_16 = arith.constant 0 : index
      %c0_17 = arith.constant 0 : index
      %c0_18 = arith.constant 0 : index
      %29 = vector.load %arg5[%c0_16, %c0_17, %c0_18] : memref<1x8x128xf32, #tpu.memory_space<vmem>>, vector<1x8x128xf32>
      %30 = vector.shape_cast %29 : vector<1x8x128xf32> to vector<8x128xf32>
      %cst_19 = arith.constant dense<0.000000e+00> : vector<8x128xf32>
      %31 = vector.multi_reduction <add>, %20, %cst_19 [0] : vector<1x8x128xf32> to vector<8x128xf32>
      %32 = arith.addf %30, %31 : vector<8x128xf32>
      %c0_20 = arith.constant 0 : index
      %c0_21 = arith.constant 0 : index
      %c0_22 = arith.constant 0 : index
      %33 = vector.load %arg5[%c0_20, %c0_21, %c0_22] : memref<1x8x128xf32, #tpu.memory_space<vmem>>, vector<1x8x128xf32>
      %34 = vector.shape_cast %33 : vector<1x8x128xf32> to vector<8x128xf32>
      %35 = vector.shape_cast %32 : vector<8x128xf32> to vector<1x8x128xf32>
      tpu.vector_store %arg5[%c0_20, %c0_21, %c0_22], %35 {strides = array<i32>} : memref<1x8x128xf32, #tpu.memory_space<vmem>>, vector<1x8x128xf32>,
      %c0_23 = arith.constant 0 : index
      %c0_24 = arith.constant 0 : index
      %c0_25 = arith.constant 0 : index
      %36 = vector.load %arg6[%c0_23, %c0_24, %c0_25] : memref<1x8x128xf32, #tpu.memory_space<vmem>>, vector<1x8x128xf32>
      %37 = vector.shape_cast %36 : vector<1x8x128xf32> to vector<8x128xf32>
      %cst_26 = arith.constant dense<0.000000e+00> : vector<8x128xf32>
      %38 = vector.multi_reduction <add>, %19, %cst_26 [0] : vector<1x8x128xf32> to vector<8x128xf32>
      %39 = arith.addf %37, %38 : vector<8x128xf32>
      %c0_27 = arith.constant 0 : index
      %c0_28 = arith.constant 0 : index
      %c0_29 = arith.constant 0 : index
      %40 = vector.load %arg6[%c0_27, %c0_28, %c0_29] : memref<1x8x128xf32, #tpu.memory_space<vmem>>, vector<1x8x128xf32>
      %41 = vector.shape_cast %40 : vector<1x8x128xf32> to vector<8x128xf32>
      %42 = vector.shape_cast %39 : vector<8x128xf32> to vector<1x8x128xf32>
      tpu.vector_store %arg6[%c0_27, %c0_28, %c0_29], %42 {strides = array<i32>} : memref<1x8x128xf32, #tpu.memory_space<vmem>>, vector<1x8x128xf32>,
    } else {
    }
    %c1024_i32_3 = arith.constant 1024 : i32
    %10 = arith.addi %5, %c1024_i32_3 : i32
    %c2048_i32_4 = arith.constant 2048 : i32
    %11 = arith.cmpi sgt, %10, %c2048_i32_4 : i32
    %12 = arith.extui %11 : i1 to i32
    %c0_i32_5 = arith.constant 0 : i32
    %13 = arith.cmpi ne, %12, %c0_i32_5 : i32
    scf.if %13 {
      %14 = tpu.iota {dimensions = array<i32: 0>} : vector<8x128xi32>
      %15 = tpu.iota {dimensions = array<i32: 1>} : vector<8x128xi32>
      %c128_i32 = arith.constant 128 : i32
      %16 = vector.broadcast %c128_i32 : i32 to vector<8x128xi32>
      %17 = arith.muli %14, %16 : vector<8x128xi32>
      %18 = vector.broadcast %5 : i32 to vector<8x128xi32>
      %19 = arith.addi %18, %17 : vector<8x128xi32>
      %20 = arith.addi %19, %15 : vector<8x128xi32>
      %c2048_i32_6 = arith.constant 2048 : i32
      %21 = vector.broadcast %c2048_i32_6 : i32 to vector<8x128xi32>
      %22 = arith.cmpi slt, %20, %21 : vector<8x128xi32>
      %c0 = arith.constant 0 : index
      %c0_7 = arith.constant 0 : index
      %23 = vector.load %arg2[%c0, %c0_7] : memref<8x128xf32, #tpu.memory_space<vmem>>, vector<8x128xf32>
      %cst = arith.constant 0.000000e+00 : f32
      %24 = vector.broadcast %cst : f32 to vector<8x128xf32>
      %25 = arith.select %22, %23, %24 : vector<8x128xi1>, vector<8x128xf32>
      %c0_8 = arith.constant 0 : index
      %c0_9 = arith.constant 0 : index
      %26 = vector.load %arg3[%c0_8, %c0_9] : memref<8x128xf32, #tpu.memory_space<vmem>>, vector<8x128xf32>
      %cst_10 = arith.constant 0.000000e+00 : f32
      %27 = vector.broadcast %cst_10 : f32 to vector<8x128xf32>
      %28 = arith.select %22, %26, %27 : vector<8x128xi1>, vector<8x128xf32>
      %cst_11 = arith.constant 5.000000e-01 : f32
      %29 = vector.broadcast %cst_11 : f32 to vector<8x128xf32>
      %30 = arith.mulf %29, %25 : vector<8x128xf32>
      %31 = math.tanh %30 : vector<8x128xf32>
      %cst_12 = arith.constant -1.000000e+00 : f32
      %32 = vector.broadcast %cst_12 : f32 to vector<8x128xf32>
      %33 = arith.select %22, %31, %32 : vector<8x128xi1>, vector<8x128xf32>
      %34 = vector.shape_cast %33 : vector<8x128xf32> to vector<1x8x128xf32>
      %35 = vector.shape_cast %28 : vector<8x128xf32> to vector<1x8x128xf32>
      %c0_13 = arith.constant 0 : index
      %c0_14 = arith.constant 0 : index
      %c0_15 = arith.constant 0 : index
      %36 = vector.load %arg4[%c0_13, %c0_14, %c0_15] : memref<1x8x128xf32, #tpu.memory_space<vmem>>, vector<1x8x128xf32>
      %37 = vector.shape_cast %36 : vector<1x8x128xf32> to vector<8x128xf32>
      %38 = arith.mulf %34, %35 : vector<1x8x128xf32>
      %cst_16 = arith.constant dense<0.000000e+00> : vector<8x128xf32>
      %39 = vector.multi_reduction <add>, %38, %cst_16 [0] : vector<1x8x128xf32> to vector<8x128xf32>
      %40 = arith.addf %37, %39 : vector<8x128xf32>
      %c0_17 = arith.constant 0 : index
      %c0_18 = arith.constant 0 : index
      %c0_19 = arith.constant 0 : index
      %41 = vector.load %arg4[%c0_17, %c0_18, %c0_19] : memref<1x8x128xf32, #tpu.memory_space<vmem>>, vector<1x8x128xf32>
      %42 = vector.shape_cast %41 : vector<1x8x128xf32> to vector<8x128xf32>
      %43 = vector.shape_cast %40 : vector<8x128xf32> to vector<1x8x128xf32>
      tpu.vector_store %arg4[%c0_17, %c0_18, %c0_19], %43 {strides = array<i32>} : memref<1x8x128xf32, #tpu.memory_space<vmem>>, vector<1x8x128xf32>,
      %c0_20 = arith.constant 0 : index
      %c0_21 = arith.constant 0 : index
      %c0_22 = arith.constant 0 : index
      %44 = vector.load %arg5[%c0_20, %c0_21, %c0_22] : memref<1x8x128xf32, #tpu.memory_space<vmem>>, vector<1x8x128xf32>
      %45 = vector.shape_cast %44 : vector<1x8x128xf32> to vector<8x128xf32>
      %cst_23 = arith.constant dense<0.000000e+00> : vector<8x128xf32>
      %46 = vector.multi_reduction <add>, %35, %cst_23 [0] : vector<1x8x128xf32> to vector<8x128xf32>
      %47 = arith.addf %45, %46 : vector<8x128xf32>
      %c0_24 = arith.constant 0 : index
      %c0_25 = arith.constant 0 : index
      %c0_26 = arith.constant 0 : index
      %48 = vector.load %arg5[%c0_24, %c0_25, %c0_26] : memref<1x8x128xf32, #tpu.memory_space<vmem>>, vector<1x8x128xf32>
      %49 = vector.shape_cast %48 : vector<1x8x128xf32> to vector<8x128xf32>
      %50 = vector.shape_cast %47 : vector<8x128xf32> to vector<1x8x128xf32>
      tpu.vector_store %arg5[%c0_24, %c0_25, %c0_26], %50 {strides = array<i32>} : memref<1x8x128xf32, #tpu.memory_space<vmem>>, vector<1x8x128xf32>,
      %c0_27 = arith.constant 0 : index
      %c0_28 = arith.constant 0 : index
      %c0_29 = arith.constant 0 : index
      %51 = vector.load %arg6[%c0_27, %c0_28, %c0_29] : memref<1x8x128xf32, #tpu.memory_space<vmem>>, vector<1x8x128xf32>
      %52 = vector.shape_cast %51 : vector<1x8x128xf32> to vector<8x128xf32>
      %cst_30 = arith.constant dense<0.000000e+00> : vector<8x128xf32>
      %53 = vector.multi_reduction <add>, %34, %cst_30 [0] : vector<1x8x128xf32> to vector<8x128xf32>
      %54 = arith.addf %52, %53 : vector<8x128xf32>
      %c0_31 = arith.constant 0 : index
      %c0_32 = arith.constant 0 : index
      %c0_33 = arith.constant 0 : index
      %55 = vector.load %arg6[%c0_31, %c0_32, %c0_33] : memref<1x8x128xf32, #tpu.memory_space<vmem>>, vector<1x8x128xf32>
      %56 = vector.shape_cast %55 : vector<1x8x128xf32> to vector<8x128xf32>
      %57 = vector.shape_cast %54 : vector<8x128xf32> to vector<1x8x128xf32>
      tpu.vector_store %arg6[%c0_31, %c0_32, %c0_33], %57 {strides = array<i32>} : memref<1x8x128xf32, #tpu.memory_space<vmem>>, vector<1x8x128xf32>,
    } else {
    }
    return
  }
  func.func @transform_0(%arg0: i32, %arg1: i32) -> (i32, i32) {
    %c1_i32 = arith.constant 1 : i32
    %0 = arith.muli %arg0, %c1_i32 : i32
    %1 = arith.addi %0, %arg1 : i32
    %c0_i32 = arith.constant 0 : i32
    %c0_i32_0 = arith.constant 0 : i32
    return %1, %c0_i32 : i32, i32
  }
  func.func @transform_1(%arg0: i32, %arg1: i32) -> (i32, i32) {
    %c1_i32 = arith.constant 1 : i32
    %0 = arith.muli %arg0, %c1_i32 : i32
    %1 = arith.addi %0, %arg1 : i32
    %c0_i32 = arith.constant 0 : i32
    %c0_i32_0 = arith.constant 0 : i32
    return %1, %c0_i32 : i32, i32
  }
  func.func @transform_2(%arg0: i32, %arg1: i32) -> (i32, i32, i32) {
    %c0_i32 = arith.constant 0 : i32
    %c0_i32_0 = arith.constant 0 : i32
    %c0_i32_1 = arith.constant 0 : i32
    return %arg0, %c0_i32, %c0_i32_0 : i32, i32, i32
  }
  func.func @transform_3(%arg0: i32, %arg1: i32) -> (i32, i32, i32) {
    %c0_i32 = arith.constant 0 : i32
    %c0_i32_0 = arith.constant 0 : i32
    %c0_i32_1 = arith.constant 0 : i32
    return %arg0, %c0_i32, %c0_i32_0 : i32, i32, i32
  }
  func.func @transform_4(%arg0: i32, %arg1: i32) -> (i32, i32, i32) {
    %c0_i32 = arith.constant 0 : i32
    %c0_i32_0 = arith.constant 0 : i32
    %c0_i32_1 = arith.constant 0 : i32
    return %arg0, %c0_i32, %c0_i32_0 : i32, i32, i32
  }
}

</mosaic_0001>

<bundles_post_ra>
// kernel: tpu_custom_call.1
= control target key start
LH: loop header
LB: loop body
LE: loop exit
PB: predicated region body
PF: predicated region fallthrough
CT: control target
= control target key end

     0   :  { %10 = vsyncpa [#allocation3], 0  ;;  %s1242_s0 = inlined_call_operand.hbm [shape: f32[16,128], index: 0, kind: input, shape index: {}]   ;;  %s1243_s1 = inlined_call_operand.hbm [shape: f32[16,128], index: 1, kind: input, shape index: {}]   ;;  %s1244_s2 = inlined_call_operand.hbm [shape: f32[2,8,128], index: 2, kind: output, shape index: {0}]   ;;  %s1245_s3 = inlined_call_operand.hbm [shape: f32[2,8,128], index: 3, kind: output, shape index: {1}]   ;;  %s1246_s4 = inlined_call_operand.hbm [shape: f32[2,8,128], index: 4, kind: output, shape index: {2}]  }
   0x1   :  { %12 = vsyncpa [#allocation3 + $0x1], 0 }
   0x2   :  { %13 = vsyncpa [#allocation6], 0 }
   0x3   :  { %15 = vsyncpa [#allocation6 + $0x1], 0 }
   0x4   :  { %16 = vsyncpa [#allocation4], 0 }
   0x5   :  { %18 = vsyncpa [#allocation4 + $0x1], 0 }
   0x6   :  { %19 = vsyncpa [#allocation9], 0 }
   0x7   :  { %21 = vsyncpa [#allocation9 + $0x1], 0  ;;  %s912_s15 = smov 0   ;;  %s914_s16 = smov 0  }
   0x8   :  { %s916_s17 = smov 0   ;;  %s918_s18 = smov 0  }
   0x9   :  { %s920_s19 = smov 0   ;;  %s922_s20 = smov 0  }
   0xa LB: > { %s943_s21 = sadd.s32 4294967295, %s879_s20   ;;  %s1247_s22 = sadd.s32 4294967294, %s879_s20   ;;  %s879_s20 = sphi %s922_s20, %s27_s20   ;;  %s875_s19 = sphi %s920_s19, %s1268_s19   ;;  %s871_s18 = sphi %s918_s18, %s1267_s18   ;;  %s867_s17 = sphi %s916_s17, %s1266_s17   ;;  %s863_s16 = sphi %s914_s16, %s1265_s16   ;;  %s859_s15 = sphi %s912_s15, %s1264_s15  }
   0xb   : > { %s39_s23 = sadd.s32 1, %s875_s19  ;;  %s48_s24 = sadd.s32 1, %s867_s17 }
   0xc   : > { %p41_p0 = scmp.ge.s32.totalorder %s39_s23, 2  ;;  %p55_p1 = scmp.ne.s32.totalorder %s867_s17, %s863_s16 }
   0xd   : > { %p56_p2 = scmp.eq.s32.totalorder %s879_s20, 0  ;;  %p61_p3 = scmp.ne.s32.totalorder %s863_s16, %s859_s15 }
   0xe   : > { %s1270_s23 = smov (%p41_p0, %s39_s23), 0  ;;  %p62_p5 = scmp.eq.s32.totalorder %s943_s21, 0 }
   0xf   : > { %p955_p4 = por %p56_p2, %p55_p1  ;;  %s45_s26 = ssub.s32 %s875_s19, %s1270_s23 }
  0x10   : > { %p113_p6 = scmp.eq.s32.totalorder %s943_s21, 1  ;;  %p46_p7 = scmp.eq.s32.totalorder %s45_s26, 0 }
  0x11   : > { %p963_p8 = por %p62_p5, %p61_p3  ;;  %p119_p10 = scmp.eq.s32.totalorder %s1247_s22, 1 }
  0x12   : > { %p967_p9 = por %p113_p6, %p55_p1  ;;  %p618_p13 = scmp.lt.s32.totalorder %s879_s20, 2 }
  0x13   : > { %s1251_s27 = scalar_select %p963_p8, 1, 0 }
  0x14   : > { %s1252_s28 = scalar_select %p967_p9, 1, 0 }
  0x15   : > { %s974_s29 = scalar_select %p46_p7, %s867_s17, %s48_s24  }
  0x16   : > { %p976_p11 = por %p119_p10, %p61_p3  ;;  %s983_s5 = sand.u32 1, %s867_s17  }
  0x17   : > { %s570_s6 = sshll.u32 %s983_s5, 3  ;;  %s571_s7 = sshll.u32 %s875_s19, 7 }
  0x18   : > { %s1253_s30 = scalar_select %p976_p11, 1, 0 }
  0x19   : > { %s992_s10 = scalar_lea.hbm %s1242_s0, %s571_s7  ;;  %s195_s11 = scalar_lea.vmem [#allocation2], %s570_s6 }
  0x1a   : > { %s203_s12 = sshll.u32 %s195_s11, 4  ;;  %p1000_p0 = pnand %p618_p13, %p955_p4  ;;  %s996_s12 = int_to_ptr.vmem [resolvable:$true] %s203_s12 }
  0x1b   : > { %s192_s14 = scalar_lea.sflag [#allocation3], %s983_s5  ;;  %s673_s24 = scalar_lea.hbm %s992_s10, 128 }
  0x1c   : > { %p674_p3 = scmp.ne.s32.totalorder %s992_s10, %s673_s24  ;;  %p675_p5 = pneg %p1000_p0 }
  0x1d   : > { %s678_s25 = scalar_lea.hbm %s1242_s0, 256  ;;  %p679_p4 = scmp.lt.u32.totalorder %s992_s10, %s1242_s0 }
  0x1e   : > { %p676_p6 = pnand %p675_p5, %p674_p3  ;;  %p680_p10 = scmp.lt.u32.totalorder %s678_s25, %s673_s24 }
  0x1f   : > { %p682_p12 = scmp.lt.u32.totalorder %s673_s24, %s992_s10 }
  0x20   : > { %p677_p7 = pneg %p676_p6  ;;  %p681_p13 = por %p680_p10, %p679_p4 }
  0x22   : > { %p683_p1 = por %p682_p12, %p681_p13 }
  0x24   : > { %p684_p2 = pnand %p683_p1, %p677_p7 }
  0x26   : > { %687 = shalt.err (!%p684_p2)
}
  0x27   : > { %s688_s22 = scalar_lea.vmem %s996_s12, 128  ;;  %s881_s26 = smov [#allocation2]  }
  0x28   : > { %p689_p3 = scmp.ne.s32.totalorder %s996_s12, %s688_s22  ;;  %s693_s8 = sshll.u32 %s881_s26, 4  ;;  %s694_s8 = int_to_ptr.vmem [resolvable:$false] %s693_s8 }
  0x29   : > { %s695_s9 = scalar_lea.vmem %s694_s8, 256  ;;  %p696_p9 = scmp.lt.s32.totalorder %s996_s12, %s694_s8 }
  0x2a   : > { %p691_p6 = pnand %p689_p3, %p675_p5  ;;  %p697_p4 = scmp.lt.s32.totalorder %s695_s9, %s688_s22 }
  0x2c   : > { %p692_p11 = pneg %p691_p6  ;;  %p698_p10 = por %p697_p4, %p696_p9 }
  0x2e   : > { %p699_p12 = pnand %p698_p10, %p692_p11 }
  0x30   : > { %702 = shalt.err (!%p699_p12)
}
  0x31   : > { %604 = dma.hbm_to_vmem [thread:$0]  (!%p1000_p0), %s992_s10, 128, %s996_s12, %s192_s14  }
  0x32   : > { %p1255_p1 = scmp.lt.s32.totalorder %s879_s20, 3  ;;  %p1256_p2 = scmp.ge.s32.totalorder %s879_s20, 1 }
  0x33   : > { %s1045_s11 = scalar_lea.hbm %s1243_s1, %s571_s7  ;;  %s214_s26 = scalar_lea.vmem [#allocation5], %s570_s6 }
  0x34   : > { %p1036_p7 = pnand %p1256_p2, %p1255_p1  ;;  %s222_s8 = sshll.u32 %s214_s26, 4  ;;  %s223_s8 = int_to_ptr.vmem [resolvable:$true] %s222_s8 }
  0x35   : > { %s211_s10 = scalar_lea.sflag [#allocation6], %s983_s5  ;;  %s703_s12 = scalar_lea.hbm %s1045_s11, 128 }
  0x36   : > { %s1257_s24 = scalar_select %p1036_p7, 1, 0 }
  0x37   : > { %p704_p9 = scmp.ne.s32.totalorder %s1045_s11, %s703_s12  ;;  %s708_s7 = scalar_lea.hbm %s1243_s1, 256 }
  0x38   : > { %p709_p3 = scmp.lt.u32.totalorder %s1045_s11, %s1243_s1  ;;  %p710_p6 = scmp.lt.u32.totalorder %s708_s7, %s703_s12 }
  0x39   : > { %p706_p11 = pnand %p704_p9, %p675_p5  ;;  %p712_p10 = scmp.lt.u32.totalorder %s703_s12, %s1045_s11 }
  0x3a   : > { %p711_p4 = por %p710_p6, %p709_p3 }
  0x3b   : > { %p707_p13 = pneg %p706_p11 }
  0x3c   : > { %p713_p12 = por %p712_p10, %p711_p4 }
  0x3e   : > { %p714_p1 = pnand %p713_p12, %p707_p13 }
  0x40   : > { %717 = shalt.err (!%p714_p1)
}
  0x41   : > { %s718_s5 = scalar_lea.vmem %s223_s8, 128  ;;  %s882_s6 = smov [#allocation5]  }
  0x42   : > { %p719_p2 = scmp.ne.s32.totalorder %s223_s8, %s718_s5  ;;  %s723_s26 = sshll.u32 %s882_s6, 4  ;;  %s724_s26 = int_to_ptr.vmem [resolvable:$false] %s723_s26 }
  0x43   : > { %s725_s14 = scalar_lea.vmem %s724_s26, 256  ;;  %p726_p8 = scmp.lt.s32.totalorder %s223_s8, %s724_s26 }
  0x44   : > { %p721_p9 = pnand %p719_p2, %p675_p5  ;;  %p727_p7 = scmp.lt.s32.totalorder %s725_s14, %s718_s5 }
  0x46   : > { %p722_p11 = pneg %p721_p9  ;;  %p728_p3 = por %p727_p7, %p726_p8 }
  0x48   : > { %p729_p6 = pnand %p728_p3, %p722_p11 }
  0x4a   : > { %732 = shalt.err (!%p729_p6)
}
  0x4b   : > { %607 = dma.hbm_to_vmem [thread:$0]  (!%p1000_p0), %s1045_s11, 128, %s223_s8, %s211_s10  }
  0x4c   : > { %p1258_p13 = scmp.ne.s32.totalorder %s1257_s24, 0 }
  0x4d   : > { %s1072_s12 = sand.u32 (!%p1258_p13), 1, %s863_s16   ;;  %p1259_p8 = scmp.ne.s32.totalorder (!%p1258_p13), %s1251_s27, 0 }
  0x4e   : > { %231 = sbr.rel (%p1258_p13) target bundleno = 215 (0xd7), region = 28  ;;  %s1075_s9 = sshll.u32 (!%p1258_p13), %s1072_s12, 3 }
  0x4f   : > { %s234_s7 = scalar_lea.sflag (!%p1258_p13), [#allocation3], %s1072_s12  ;;  %s237_s22 = scalar_lea.vmem (!%p1258_p13), [#allocation2], %s1075_s9 }
  0x55   : > { %842 = dma.done.wait (%p1259_p8), %s234_s7, 128  }
  0x56   : > { %844 = vsyncadd (%p1259_p8), %s234_s7, 4294967168  ;;  %s243_s13 = scalar_lea.sflag [#allocation6], %s1072_s12  ;;  %s246_s24 = scalar_lea.vmem [#allocation5], %s1075_s9 }
  0x57   : > { %846 = dma.done.wait (%p1259_p8), %s243_s13, 128  }
  0x58   : > { %848 = vsyncadd (%p1259_p8), %s243_s13, 4294967168  ;;  %s1090_s11 = scalar_lea.vmem [#allocation7], %s1075_s9  ;;  %v883_v0 = vmov 0.0   ;;  %s1094_s8 = scalar_lea.vmem [#allocation8], %s1075_s9 }
  0x59   : > { %292 = vst [vmem:[%s1090_s11] sm:$0xff] %v883_v0  ;;  %293 = vst [vmem:[%s1094_s8] sm:$0xff] %v883_v0  ;;  %s580_s10 = sshll.u32 %s871_s18, 10  ;;  %s1099_s25 = scalar_lea.vmem [#allocation10], %s1075_s9 }
  0x5a   : > { %294 = vst [vmem:[%s1099_s25] sm:$0xff] %v883_v0  ;;  %s297_s27 = sadd.s32 1024, %s580_s10 }
  0x5b   : > { %p581_p0 = scmp.gt.s32.totalorder %s297_s27, 2048 }
  0x5c   : > { %v302_v1 = vld [vmem:[%s237_s22] sm:$0xff] (!%p581_p0)  ;;  %v303_v2 = vld [vmem:[%s246_s24] sm:$0xff] (!%p581_p0) }
  0x5d   : > { %301 = sbr.rel (%p581_p0) target bundleno = 111 (0x6f), region = 44  ;;  %v304_v3 = vmul.f32 (!%p581_p0), 0.5, %v302_v1 }
  0x5f   : > { %669 = vtanh.f32 (!%p581_p0), %v304_v3 }
  0x60   : > { %v311_v4 = vld [vmem:[%s1094_s8] sm:$0xff] (!%p581_p0)  ;;  %v306_v8 = vld [vmem:[%s1090_s11] sm:$0xff] (!%p581_p0) }
  0x61   : > { %v313_v5 = vadd.f32 (!%p581_p0), %v311_v4, %v303_v2  ;;  %v315_v6 = vld [vmem:[%s1099_s25] sm:$0xff] (!%p581_p0) }
  0x63   : > { %314 = vst [vmem:[%s1094_s8] sm:$0xff] (!%p581_p0), %v313_v5 }
  0x69   : > { %v670_v7 = vpop.eup %669 }
  0x6a   : > { %v307_v9 = vmul.f32 %v670_v7, %v303_v2  ;;  %v317_v10 = vadd.f32 %v670_v7, %v315_v6 }
  0x6c   : > { %v309_v11 = vadd.f32 %v307_v9, %v306_v8  ;;  %318 = vst [vmem:[%s1099_s25] sm:$0xff] %v317_v10 }
  0x6e   : > { %310 = vst [vmem:[%s1090_s11] sm:$0xff] %v309_v11 }
  0x6f PF: > { %p582_p5 = scmp.le.s32.totalorder %s297_s27, 2048 }
  0x70   : > { %v323_v12 = vlaneseq (!%p582_p5)  ;;  %v328_v14 = vstv (!%p582_p5), %s580_s10  ;;  %v332_v19 = vld [vmem:[%s237_s22] sm:$0xff] (!%p582_p5)  ;;  %v334_v20 = vld [vmem:[%s246_s24] sm:$0xff] (!%p582_p5) }
  0x71   : > { %322 = sbr.rel (%p582_p5) target bundleno = 143 (0x8f), region = 48 }
  0x72   : > { %v324_v13 = vshrl.u32 (!%p582_p5), %v323_v12, 7  ;;  %v326_v15 = vand.u32 (!%p582_p5), 127, %v323_v12 }
  0x73   : > { %v348_v26 = vld [vmem:[%s1099_s25] sm:$0xff] (!%p582_p5) }
  0x74   : > { %v327_v16 = vmul.u32 (!%p582_p5), 128, %v324_v13 }
  0x75   : > { %v344_v21 = vld [vmem:[%s1094_s8] sm:$0xff] (!%p582_p5)  ;;  %v339_v29 = vld [vmem:[%s1090_s11] sm:$0xff] (!%p582_p5) }
  0x76   : > { %v329_v17 = vadd.s32 (!%p582_p5), %v328_v14, %v327_v16 }
  0x78   : > { %v330_v18 = vadd.s32 %v329_v17, %v326_v15 }
  0x7a   : > { %vm331_vm0 = vcmp.lt.s32.totalorder %v330_v18, 2048 }
  0x7b   : > { %v333_v22 = vsel %vm331_vm0, %v332_v19, 0.0  ;;  %v335_v23 = vsel %vm331_vm0, %v334_v20, 0.0 }
  0x7c   : > { %v336_v24 = vmul.f32 0.5, %v333_v22  ;;  %v346_v25 = vadd.f32 %v344_v21, %v335_v23 }
  0x7e   : > { %671 = vtanh.f32 %v336_v24  ;;  %347 = vst [vmem:[%s1094_s8] sm:$0xff] %v346_v25 }
  0x88   : > { %v672_v27 = vpop.eup %671 }
  0x89   : > { %v338_v28 = vsel %vm331_vm0, %v672_v27, -1.0 }
  0x8a   : > { %v340_v30 = vmul.f32 %v338_v28, %v335_v23  ;;  %v350_v31 = vadd.f32 %v348_v26, %v338_v28 }
  0x8c   : > { %v342_v32 = vadd.f32 %v340_v30, %v339_v29  ;;  %351 = vst [vmem:[%s1099_s25] sm:$0xff] %v350_v31 }
  0x8e   : > { %343 = vst [vmem:[%s1090_s11] sm:$0xff] %v342_v32 }
  0x8f PF: > { %s357_s5 = sand.u32 1, %s943_s21   ;;  %s1124_s6 = sshll.u32 %s871_s18, 7 }
  0x90   : > { %s1130_s9 = scalar_lea.hbm %s1245_s3, %s1124_s6  ;;  %s389_s7 = sshll.u32 %s1094_s8, 4  ;;  %s1133_s7 = int_to_ptr.vmem [resolvable:$true] %s389_s7 }
  0x91   : > { %s1139_s24 = scalar_lea.hbm %s1244_s2, %s1124_s6  ;;  %s1141_s18 = scalar_lea.sflag [#allocation9], %s357_s5 }
  0x92   : > { %s733_s21 = scalar_lea.vmem %s1133_s7, 128  ;;  %p1260_p4 = scmp.ne.s32.totalorder %s1252_s28, 0 }
  0x93   : > { %p734_p7 = scmp.ne.s32.totalorder %s1133_s7, %s733_s21  ;;  %s884_s10 = smov [#allocation8]  }
  0x94   : > { %s737_s27 = sshll.u32 %s884_s10, 4  ;;  %s738_s27 = int_to_ptr.vmem [resolvable:$false] %s737_s27 }
  0x95   : > { %p735_p10 = pnand %p734_p7, %p1260_p4  ;;  %s739_s8 = scalar_lea.vmem %s738_s27, 256 }
  0x96   : > { %p740_p1 = scmp.lt.s32.totalorder %s1133_s7, %s738_s27  ;;  %p741_p2 = scmp.lt.s32.totalorder %s739_s8, %s733_s21 }
  0x97   : > { %p736_p12 = pneg %p735_p10 }
  0x98   : > { %p742_p9 = por %p741_p2, %p740_p1 }
  0x9a   : > { %p743_p11 = pnand %p742_p9, %p736_p12 }
  0x9c   : > { %746 = shalt.err (!%p743_p11)
}
  0x9d   : > { %s747_s5 = scalar_lea.hbm %s1130_s9, 128  ;;  %s751_s22 = scalar_lea.hbm %s1245_s3, 256 }
  0x9e   : > { %p748_p3 = scmp.ne.s32.totalorder %s1130_s9, %s747_s5  ;;  %p752_p8 = scmp.lt.u32.totalorder %s1130_s9, %s1245_s3 }
  0x9f   : > { %p753_p0 = scmp.lt.u32.totalorder %s751_s22, %s747_s5  ;;  %p755_p7 = scmp.lt.u32.totalorder %s747_s5, %s1130_s9 }
  0xa0   : > { %p749_p6 = pnand %p748_p3, %p1260_p4 }
  0xa1   : > { %p754_p5 = por %p753_p0, %p752_p8 }
  0xa2   : > { %p750_p13 = pneg %p749_p6 }
  0xa3   : > { %p756_p10 = por %p755_p7, %p754_p5 }
  0xa5   : > { %p757_p12 = pnand %p756_p10, %p750_p13 }
  0xa7   : > { %760 = shalt.err (!%p757_p12)
}
  0xa8   : > { %596 = dma.vmem_to_hbm [thread:$0]  (%p1260_p4), %s1133_s7, 128, %s1130_s9, %s1141_s18  }
  0xa9   : > { %s376_s21 = sshll.u32 %s1090_s11, 4  ;;  %s1170_s26 = scalar_lea.hbm %s1246_s4, %s1124_s6  ;;  %s1172_s21 = int_to_ptr.vmem [resolvable:$true] %s376_s21 }
  0xaa   : > { %s402_s5 = sshll.u32 %s1099_s25, 4  ;;  %s353_s14 = scalar_lea.sflag [#allocation4], %s1072_s12  ;;  %s403_s5 = int_to_ptr.vmem [resolvable:$true] %s402_s5 }
  0xab   : > { %s761_s22 = scalar_lea.vmem %s1172_s21, 128  ;;  %s885_s13 = smov [#allocation7]  }
  0xac   : > { %p762_p1 = scmp.ne.s32.totalorder %s1172_s21, %s761_s22  ;;  %s765_s9 = sshll.u32 %s885_s13, 4  ;;  %s766_s9 = int_to_ptr.vmem [resolvable:$false] %s765_s9 }
  0xad   : > { %s767_s11 = scalar_lea.vmem %s766_s9, 256  ;;  %p768_p11 = scmp.lt.s32.totalorder %s1172_s21, %s766_s9 }
  0xae   : > { %p763_p2 = pnand %p762_p1, %p1260_p4  ;;  %p769_p3 = scmp.lt.s32.totalorder %s767_s11, %s761_s22 }
  0xb0   : > { %p764_p9 = pneg %p763_p2  ;;  %p770_p6 = por %p769_p3, %p768_p11 }
  0xb2   : > { %p771_p13 = pnand %p770_p6, %p764_p9 }
  0xb4   : > { %774 = shalt.err (!%p771_p13)
}
  0xb5   : > { %s775_s12 = scalar_lea.hbm %s1139_s24, 128  ;;  %s779_s10 = scalar_lea.hbm %s1244_s2, 256 }
  0xb6   : > { %p776_p8 = scmp.ne.s32.totalorder %s1139_s24, %s775_s12  ;;  %p780_p7 = scmp.lt.u32.totalorder %s1139_s24, %s1244_s2 }
  0xb7   : > { %p781_p10 = scmp.lt.u32.totalorder %s779_s10, %s775_s12  ;;  %p783_p1 = scmp.lt.u32.totalorder %s775_s12, %s1139_s24 }
  0xb8   : > { %p777_p0 = pnand %p776_p8, %p1260_p4 }
  0xb9   : > { %p782_p12 = por %p781_p10, %p780_p7 }
  0xba   : > { %p778_p5 = pneg %p777_p0 }
  0xbb   : > { %p784_p2 = por %p783_p1, %p782_p12 }
  0xbd   : > { %p785_p9 = pnand %p784_p2, %p778_p5 }
  0xbf   : > { %788 = shalt.err (!%p785_p9)
}
  0xc0   : > { %595 = dma.vmem_to_hbm [thread:$0]  (%p1260_p4), %s1172_s21, 128, %s1139_s24, %s353_s14  }
  0xc1   : > { %s789_s22 = scalar_lea.vmem %s403_s5, 128  ;;  %s886_s13 = smov [#allocation10]  }
  0xc2   : > { %p790_p11 = scmp.ne.s32.totalorder %s403_s5, %s789_s22  ;;  %s793_s9 = sshll.u32 %s886_s13, 4  ;;  %s794_s9 = int_to_ptr.vmem [resolvable:$false] %s793_s9 }
  0xc3   : > { %s795_s11 = scalar_lea.vmem %s794_s9, 256  ;;  %p796_p13 = scmp.lt.s32.totalorder %s403_s5, %s794_s9 }
  0xc4   : > { %p791_p3 = pnand %p790_p11, %p1260_p4  ;;  %p797_p8 = scmp.lt.s32.totalorder %s795_s11, %s789_s22 }
  0xc6   : > { %p792_p6 = pneg %p791_p3  ;;  %p798_p0 = por %p797_p8, %p796_p13 }
  0xc8   : > { %p799_p5 = pnand %p798_p0, %p792_p6 }
  0xca   : > { %802 = shalt.err (!%p799_p5)
}
  0xcb   : > { %s803_s25 = scalar_lea.hbm %s1170_s26, 128  ;;  %s807_s14 = scalar_lea.hbm %s1246_s4, 256 }
  0xcc   : > { %p804_p7 = scmp.ne.s32.totalorder %s1170_s26, %s803_s25  ;;  %p808_p1 = scmp.lt.u32.totalorder %s1170_s26, %s1246_s4 }
  0xcd   : > { %p809_p2 = scmp.lt.u32.totalorder %s807_s14, %s803_s25  ;;  %p811_p11 = scmp.lt.u32.totalorder %s803_s25, %s1170_s26 }
  0xce   : > { %p805_p10 = pnand %p804_p7, %p1260_p4 }
  0xcf   : > { %p810_p9 = por %p809_p2, %p808_p1 }
  0xd0   : > { %p806_p12 = pneg %p805_p10 }
  0xd1   : > { %p812_p3 = por %p811_p11, %p810_p9 }
  0xd3   : > { %p813_p6 = pnand %p812_p3, %p806_p12 }
  0xd5   : > { %816 = shalt.err (!%p813_p6)
}
  0xd6   : > { %597 = dma.vmem_to_hbm [thread:$0]  (%p1260_p4), %s403_s5, 128, %s1170_s26, %s1141_s18  }
  0xd7 PF: > { %s414_s7 = sand.u32 1, %s859_s15   ;;  %p1261_p13 = scmp.ne.s32.totalorder %s1253_s30, 0 }
  0xd8   : > { %p1262_p8 = scmp.ge.s32.totalorder %s879_s20, 2  ;;  %s415_s10 = scalar_lea.sflag [#allocation4], %s414_s7 }
  0xda   : > { %p609_p0 = pnand %p1262_p8, %p1261_p13 }
  0xdc   : > { %850 = dma.done.wait (!%p609_p0), %s415_s10, 128  }
  0xdd   : > { %852 = vsyncadd (!%p609_p0), %s415_s10, 4294967168  ;;  %s1263_s27 = sadd.s32 4294967294, %s879_s20  }
  0xde   : > { %s423_s8 = sand.u32 1, %s1263_s27  }
  0xdf   : > { %s424_s22 = scalar_lea.sflag [#allocation9], %s423_s8 }
  0xe0   : > { %854 = dma.done.wait (!%p609_p0), %s424_s22, 256  }
  0xe1   : > { %856 = vsyncadd (!%p609_p0), %s424_s22, 4294967040  ;;  %s27_s20 = sadd.s32 1, %s879_s20   ;;  %s1264_s15 = smov %s863_s16 }
  0xe2   : > { %p24_p4 = scmp.ge.s32.totalorder %s27_s20, 4   ;;  %s1265_s16 = smov %s867_s17 }
  0xe3   : > { %s1266_s17 = smov %s974_s29  ;;  %s1267_s18 = smov %s875_s19 }
  0xe4   : > { %s1268_s19 = smov %s1270_s23  ;;  %26 = sbr.rel (!%p24_p4) target bundleno = 10 (0xa), region = 130 }
  0xeb   :  { %438 = vsyncpa [#allocation3], 1 }
  0xec   :  { %440 = vsyncpa [#allocation3 + $0x1], 1 }
  0xed   :  { %441 = vsyncpa [#allocation6], 1 }
  0xee   :  { %443 = vsyncpa [#allocation6 + $0x1], 1 }
  0xef   :  { %444 = vsyncpa [#allocation4], 1 }
  0xf0   :  { %446 = vsyncpa [#allocation4 + $0x1], 1 }
  0xf1   :  { %447 = vsyncpa [#allocation9], 1 }
  0xf2   :  { %449 = vsyncpa [#allocation9 + $0x1], 1 }

</bundles_post_ra>
